<compile_context>
chip_gen: v5e
topology: v5e:2x2
jax: 0.10.0
libtpu: 0.0.40
codegen_flags: <defaults>
</compile_context>

<pallas_src>
import functools
from collections import OrderedDict

import jax
import jax.numpy as jnp
import numpy as np
from jax import lax
from jax.experimental import pallas as pl
from jax.experimental.pallas import tpu as pltpu


# ----------------------- generation-aware VMEM budgets -----------------------


@functools.lru_cache(maxsize=1)
def _vmem_budgets():
    """Return (per-grid-step working-set budget, vmem_limit_bytes)."""
    cap = None
    try:
        cap = getattr(pltpu.get_tpu_info(), "vmem_capacity_bytes", None)
    except Exception:
        cap = None
    if cap is None:
        try:
            kind = jax.devices()[0].device_kind.lower()
            cap = 64 * 1024 * 1024 if "v7" in kind else 128 * 1024 * 1024
        except Exception:
            cap = 64 * 1024 * 1024
    if cap >= 96 * 1024 * 1024:
        # v5e / v6e: 128 MiB physical VMEM -> large blocks amortize grid overhead.
        return 48 * 1024 * 1024, 64 * 1024 * 1024
    # v7x-class (64 MiB physical per TC) or unknown: stay well inside it.
    return 22 * 1024 * 1024, 30 * 1024 * 1024


# ------------------------------- kernel body ---------------------------------


def _stats_kernel(x_ref, mean_ref, var_ref, sum_sc, sq_sc, *, hw, acc_w, n_full, rem):
    """One grid step of the streaming spatial-stats reduction.

    x_ref   : (b_blk, c_blk, s_blk) feature tile, native dtype, lane-dense.
    mean_ref: (b_blk, c_blk) f32 output (written only on the last reduce step).
    var_ref : (b_blk, c_blk) f32 output (written only on the last reduce step).
    sum_sc  : (b_blk, c_blk, acc_w) f32 per-lane partial-sum accumulator.
    sq_sc   : (b_blk, c_blk, acc_w) f32 per-lane partial-sumsq accumulator.
    """
    si = pl.program_id(2)  # spatial-reduction axis (last grid axis)

    @pl.when(si == 0)
    def _init():
        sum_sc[...] = jnp.zeros_like(sum_sc)
        sq_sc[...] = jnp.zeros_like(sq_sc)

    def acc_chunk(off, width):
        # Native-dtype vld, in-vreg upcast, pure-VPU accumulate.  The f32 temp
        # is only one acc_w-lane chunk, never the whole tile.
        chunk = x_ref[:, :, pl.ds(off, width)].astype(jnp.float32)
        if width == acc_w:
            sum_sc[...] += chunk
            sq_sc[...] += chunk * chunk
        else:  # remainder (< acc_w lanes): masked accumulate into the low lanes
            sum_sc[:, :, pl.ds(0, width)] += chunk
            sq_sc[:, :, pl.ds(0, width)] += chunk * chunk

    if n_full <= 8:
        for i in range(n_full):              # static unroll, constant offsets
            acc_chunk(i * acc_w, acc_w)
    else:
        def body(i, carry):
            acc_chunk(pl.multiple_of(i * acc_w, acc_w), acc_w)
            return carry

        lax.fori_loop(0, n_full, body, 0, unroll=4)
    if rem:
        acc_chunk(n_full * acc_w, rem)

    @pl.when(si == pl.num_programs(2) - 1)
    def _finalize():
        # Cross-lane (XLU) reduce + layout shuffle only here, once per block.
        s = jnp.sum(sum_sc[...], axis=-1)    # (b_blk, c_blk)
        ss = jnp.sum(sq_sc[...], axis=-1)
        mean = s * (1.0 / hw)
        # torch.var default is unbiased: (sumsq - HW*mean^2) / (HW-1).
        # NOTE: E[x^2]-E[x]^2 in f32 can lose precision when |mean| >> std.
        # HW == 1 is guarded (returns 0 instead of NaN/inf).
        var = (ss - s * mean) * (1.0 / max(hw - 1.0, 1.0))
        mean_ref[...] = mean
        var_ref[...] = var


# ------------------------------ tiling helpers --------------------------------


def _valid_b_blocks(B):
    # Output's second-to-last dim: multiple of 8 or full B. Prefer 8 (small
    # accumulators + parallel grid blocks), then the remaining legal sizes.
    vals = {B}
    vals.update(b for b in range(8, B, 8) if B % b == 0)
    out = sorted(vals, reverse=True)
    if 8 in vals and B > 8:
        out.remove(8)
        out.insert(0, 8)
    return out


def _valid_c_blocks(C, cap=512):
    # Must satisfy BOTH the input sublane rule (mult of 8 / full C) and the
    # output lane rule (mult of 128 / full C)  ->  128-multiples or full C.
    vals = {c for c in range(128, min(C, cap) + 1, 128) if C % c == 0}
    if not vals or C <= cap:
        vals.add(C)
    return sorted(vals, reverse=True)


def _valid_s_blocks(S):
    # Input lane dim: multiple of 128 or full S; must divide S exactly so no
    # padded (garbage) elements ever enter the sums.
    vals = {S}
    vals.update(s for s in range(128, S, 128) if S % s == 0)
    return sorted(vals, reverse=True)


def _block_bytes(b, c, s, itemsize):
    acc_w = min(128, s)
    # double-buffered input block + 2 f32 accumulators + in-flight f32 chunks
    return 2 * b * c * s * itemsize + 4 * b * c * acc_w * 4


def _pick_tiles(B, C, S, itemsize, ws_budget):
    b_cands = _valid_b_blocks(B)
    c_cands = _valid_c_blocks(C)
    s_cands = _valid_s_blocks(S)
    fallback = None
    for b in b_cands:
        for c in c_cands:
            for s in s_cands:
                if _block_bytes(b, c, s, itemsize) <= ws_budget:
                    return b, c, s
            cand = (b, c, s_cands[-1])
            if fallback is None or (
                _block_bytes(*cand, itemsize) < _block_bytes(*fallback, itemsize)
            ):
                fallback = cand
    # Nothing fits (awkward B/C/S); take the smallest legal block and let a
    # raised vmem_limit absorb it.
    return fallback


def _ensure_two_parallel_blocks(B, C, b_blk, c_blk):
    """v7x has 2 TensorCores: make the parallel sub-grid >= 2 blocks if legal."""
    if (B // b_blk) * (C // c_blk) >= 2:
        return b_blk, c_blk
    half_c = c_blk // 2
    if half_c >= 128 and half_c % 128 == 0 and C % half_c == 0:
        return b_blk, half_c
    for b in range(((B - 1) // 8) * 8, 7, -8):
        if b < B and B % b == 0:
            return b, c_blk
    return b_blk, c_blk


# ------------------------------ pallas wrapper --------------------------------


def spatial_mean_var(x):
    """Per-(B, C) spatial mean and unbiased variance of an NCHW feature map.

    Returns (f_m, f_v), both float32 of shape (B, C).  The feature tensor is
    only read (streamed once from HBM); it is never echoed through the output.
    """
    B, C, H, W = x.shape
    S = H * W
    itemsize = x.dtype.itemsize

    ws_budget, vmem_limit = _vmem_budgets()
    b_blk, c_blk, s_blk = _pick_tiles(B, C, S, itemsize, ws_budget)
    b_blk, c_blk = _ensure_two_parallel_blocks(B, C, b_blk, c_blk)
    vmem_limit = max(vmem_limit, _block_bytes(b_blk, c_blk, s_blk, itemsize) + (4 << 20))

    acc_w = min(128, s_blk)
    n_full = s_blk // acc_w
    rem = s_blk % acc_w
    grid = (B // b_blk, C // c_blk, S // s_blk)
    assert B % b_blk == 0 and C % c_blk == 0 and S % s_blk == 0

    xr = x.reshape(B, C, S)  # free: NCHW is contiguous; lane axis becomes H*W

    kernel = functools.partial(
        _stats_kernel, hw=float(S), acc_w=acc_w, n_full=n_full, rem=rem
    )

    in_spec = pl.BlockSpec((b_blk, c_blk, s_blk), lambda bi, ci, si: (bi, ci, si))
    out_spec = pl.BlockSpec((b_blk, c_blk), lambda bi, ci, si: (bi, ci))

    f_m, f_v = pl.pallas_call(
        kernel,
        out_shape=(
            jax.ShapeDtypeStruct((B, C), jnp.float32),
            jax.ShapeDtypeStruct((B, C), jnp.float32),
        ),
        grid_spec=pltpu.PrefetchScalarGridSpec(
            num_scalar_prefetch=0,
            grid=grid,
            in_specs=[in_spec],
            out_specs=[out_spec, out_spec],
            scratch_shapes=[
                pltpu.VMEM((b_blk, c_blk, acc_w), jnp.float32),
                pltpu.VMEM((b_blk, c_blk, acc_w), jnp.float32),
            ],
        ),
        compiler_params=pltpu.CompilerParams(
            dimension_semantics=("parallel", "parallel", "arbitrary"),
            vmem_limit_bytes=int(vmem_limit),
        ),
    )(xr)
    return f_m, f_v


@functools.partial(jax.jit, static_argnames=("domain_num", "dbs", "momentum"))
def _update_scale(feat, moving_mean, moving_var, *, domain_num, dbs, momentum):
    """Per-scale buffer update: Pallas stats kernel + tiny EMA in plain JAX."""
    f_m, f_v = spatial_mean_var(feat)                     # (B, C) f32
    C = f_m.shape[-1]
    dm = f_m.reshape(domain_num, dbs, C).mean(axis=1)     # (D, C)
    dv = f_v.reshape(domain_num, dbs, C).mean(axis=1)     # (D, C)
    new_mean = momentum * moving_mean + (1.0 - momentum) * dm
    new_var = momentum * moving_var + (1.0 - momentum) * dv
    return new_mean, new_var


# -------------------------------- module port ---------------------------------


class NormStatsPallas:
    """JAX/Pallas port of NormStats (only_stats=True path)."""

    def __init__(self, scale_num, domain_num, channel_num, dbs, top=0.7, momentum=0.9):
        self.scale_num = scale_num
        self.domain_num = domain_num
        self.channel_num = channel_num
        self.dbs = dbs
        self.momentum = float(momentum)
        self.top_k = int(channel_num * top)
        self.only_stats = True
        self.moving_mean_mat = jnp.zeros(
            (scale_num, domain_num, channel_num), jnp.float32
        )
        self.moving_var_mat = jnp.ones(
            (scale_num, domain_num, channel_num), jnp.float32
        )

    def is_only_stats(self, x: bool):
        if not x:
            # TODO(synk): only_stats=False (channel-similarity topk + host
            # random.random() channel drop) is not implemented in Pallas.
            raise NotImplementedError("only_stats=False branch is not implemented")
        self.only_stats = x

    def __call__(self, features):
        for s, k in enumerate(features):
            feat = features[k]
            assert feat.shape[0] == self.domain_num * self.dbs
            assert feat.shape[1] == self.channel_num
            new_m, new_v = _update_scale(
                feat,
                self.moving_mean_mat[s],
                self.moving_var_mat[s],
                domain_num=self.domain_num,
                dbs=self.dbs,
                momentum=self.momentum,
            )
            self.moving_mean_mat = self.moving_mean_mat.at[s].set(new_m)
            self.moving_var_mat = self.moving_var_mat.at[s].set(new_v)
        # only_stats=True: features pass through unchanged (no kernel round-trip).
        return features


# -------------------------------- demo / check ---------------------------------


def _reference_buffers(features, mean0, var0, domain_num, dbs, momentum):
    mean, var = mean0, var0
    for s, k in enumerate(features):
        f = features[k].astype(jnp.float32)
        C = f.shape[1]
        f_m = f.mean(axis=(2, 3))
        f_v = f.var(axis=(2, 3), ddof=1)
        dm = f_m.reshape(domain_num, dbs, C).mean(axis=1)
        dv = f_v.reshape(domain_num, dbs, C).mean(axis=1)
        mean = mean.at[s].set(momentum * mean[s] + (1 - momentum) * dm)
        var = var.at[s].set(momentum * var[s] + (1 - momentum) * dv)
    return mean, var


if __name__ == "__main__":
    scale_num, domain_num, dbs, channel_num = 3, 2, 2, 4
    B = domain_num * dbs  # 4

    key = jax.random.PRNGKey(0)
    k0, k1, k2 = jax.random.split(key, 3)
    feats = OrderedDict()
    # S = 256 (two 128-lane chunks), S = 64 (< 128 lanes), S = 196 (128 + remainder 68)
    feats["scale0"] = jax.random.normal(k0, (B, channel_num, 16, 16), dtype=jnp.float32)
    feats["scale1"] = jax.random.normal(k1, (B, channel_num, 8, 8), dtype=jnp.float32)
    feats["scale2"] = jax.random.normal(k2, (B, channel_num, 14, 14), dtype=jnp.float32)

    model = NormStatsPallas(scale_num, domain_num, channel_num, dbs, momentum=0.9)
    ref_mean0 = model.moving_mean_mat
    ref_var0 = model.moving_var_mat

    out = model(feats)
    jax.block_until_ready(model.moving_mean_mat)
    jax.block_until_ready(model.moving_var_mat)
    for v in out.values():
        jax.block_until_ready(v)

    # Forward returns the features unchanged.
    assert out is feats

    # Verify the buffer update against a plain-JAX reference.
    ref_mean, ref_var = _reference_buffers(
        feats, ref_mean0, ref_var0, domain_num, dbs, 0.9
    )
    np.testing.assert_allclose(
        np.asarray(model.moving_mean_mat), np.asarray(ref_mean), rtol=1e-4, atol=1e-5
    )
    np.testing.assert_allclose(
        np.asarray(model.moving_var_mat), np.asarray(ref_var), rtol=1e-4, atol=1e-5
    )

    print("KERNEL_OK")
</pallas_src>

<mosaic_0001>
module attributes {stable_mosaic.version = 11 : i64} {
  func.func @_stats_kernel(%arg0: i32, %arg1: i32, %arg2: i32, %arg3: memref<4x4x256xf32, #tpu.memory_space<vmem>>, %arg4: memref<4x4xf32, #tpu.memory_space<vmem>>, %arg5: memref<4x4xf32, #tpu.memory_space<vmem>>, %arg6: memref<4x4x128xf32, #tpu.memory_space<vmem>>, %arg7: memref<4x4x128xf32, #tpu.memory_space<vmem>>) attributes {dimension_semantics = [#tpu.dimension_semantics<parallel>, #tpu.dimension_semantics<parallel>, #tpu.dimension_semantics<arbitrary>], iteration_bounds = array<i64: 1, 1, 1>, scalar_prefetch = 0 : i64, scratch_operands = 2 : i64, tpu.core_type = #tpu.core_type<tc>, window_params = [{transform_indices = @transform_0, window_bounds = array<i64: 4, 4, 256>}, {transform_indices = @transform_1, window_bounds = array<i64: 4, 4>}, {transform_indices = @transform_2, window_bounds = array<i64: 4, 4>}]} {
    %c0_i32 = arith.constant 0 : i32
    %0 = arith.cmpi eq, %arg2, %c0_i32 : i32
    %1 = arith.extui %0 : i1 to i32
    %c0_i32_0 = arith.constant 0 : i32
    %2 = arith.cmpi ne, %1, %c0_i32_0 : i32
    scf.if %2 {
      %cst = arith.constant 0.000000e+00 : f32
      %22 = vector.broadcast %cst : f32 to vector<4x4x128xf32>
      %c0_31 = arith.constant 0 : index
      %c0_32 = arith.constant 0 : index
      %c0_33 = arith.constant 0 : index
      %23 = vector.load %arg6[%c0_31, %c0_32, %c0_33] : memref<4x4x128xf32, #tpu.memory_space<vmem>>, vector<4x4x128xf32>
      tpu.vector_store %arg6[%c0_31, %c0_32, %c0_33], %22 {strides = array<i32>} : memref<4x4x128xf32, #tpu.memory_space<vmem>>, vector<4x4x128xf32>,
      %cst_34 = arith.constant 0.000000e+00 : f32
      %24 = vector.broadcast %cst_34 : f32 to vector<4x4x128xf32>
      %c0_35 = arith.constant 0 : index
      %c0_36 = arith.constant 0 : index
      %c0_37 = arith.constant 0 : index
      %25 = vector.load %arg7[%c0_35, %c0_36, %c0_37] : memref<4x4x128xf32, #tpu.memory_space<vmem>>, vector<4x4x128xf32>
      tpu.vector_store %arg7[%c0_35, %c0_36, %c0_37], %24 {strides = array<i32>} : memref<4x4x128xf32, #tpu.memory_space<vmem>>, vector<4x4x128xf32>,
    } else {
    }
    %c0 = arith.constant 0 : index
    %c0_1 = arith.constant 0 : index
    %c0_2 = arith.constant 0 : index
    %3 = vector.load %arg3[%c0, %c0_1, %c0_2] : memref<4x4x256xf32, #tpu.memory_space<vmem>>, vector<4x4x128xf32>
    %c0_3 = arith.constant 0 : index
    %c0_4 = arith.constant 0 : index
    %c0_5 = arith.constant 0 : index
    %4 = vector.load %arg6[%c0_3, %c0_4, %c0_5] : memref<4x4x128xf32, #tpu.memory_space<vmem>>, vector<4x4x128xf32>
    %5 = arith.addf %4, %3 : vector<4x4x128xf32>
    %c0_6 = arith.constant 0 : index
    %c0_7 = arith.constant 0 : index
    %c0_8 = arith.constant 0 : index
    %6 = vector.load %arg6[%c0_6, %c0_7, %c0_8] : memref<4x4x128xf32, #tpu.memory_space<vmem>>, vector<4x4x128xf32>
    tpu.vector_store %arg6[%c0_6, %c0_7, %c0_8], %5 {strides = array<i32>} : memref<4x4x128xf32, #tpu.memory_space<vmem>>, vector<4x4x128xf32>,
    %c0_9 = arith.constant 0 : index
    %c0_10 = arith.constant 0 : index
    %c0_11 = arith.constant 0 : index
    %7 = vector.load %arg7[%c0_9, %c0_10, %c0_11] : memref<4x4x128xf32, #tpu.memory_space<vmem>>, vector<4x4x128xf32>
    %8 = arith.mulf %3, %3 : vector<4x4x128xf32>
    %9 = arith.addf %7, %8 : vector<4x4x128xf32>
    %c0_12 = arith.constant 0 : index
    %c0_13 = arith.constant 0 : index
    %c0_14 = arith.constant 0 : index
    %10 = vector.load %arg7[%c0_12, %c0_13, %c0_14] : memref<4x4x128xf32, #tpu.memory_space<vmem>>, vector<4x4x128xf32>
    tpu.vector_store %arg7[%c0_12, %c0_13, %c0_14], %9 {strides = array<i32>} : memref<4x4x128xf32, #tpu.memory_space<vmem>>, vector<4x4x128xf32>,
    %c0_15 = arith.constant 0 : index
    %c0_16 = arith.constant 0 : index
    %c128 = arith.constant 128 : index
    %11 = vector.load %arg3[%c0_15, %c0_16, %c128] : memref<4x4x256xf32, #tpu.memory_space<vmem>>, vector<4x4x128xf32>
    %c0_17 = arith.constant 0 : index
    %c0_18 = arith.constant 0 : index
    %c0_19 = arith.constant 0 : index
    %12 = vector.load %arg6[%c0_17, %c0_18, %c0_19] : memref<4x4x128xf32, #tpu.memory_space<vmem>>, vector<4x4x128xf32>
    %13 = arith.addf %12, %11 : vector<4x4x128xf32>
    %c0_20 = arith.constant 0 : index
    %c0_21 = arith.constant 0 : index
    %c0_22 = arith.constant 0 : index
    %14 = vector.load %arg6[%c0_20, %c0_21, %c0_22] : memref<4x4x128xf32, #tpu.memory_space<vmem>>, vector<4x4x128xf32>
    tpu.vector_store %arg6[%c0_20, %c0_21, %c0_22], %13 {strides = array<i32>} : memref<4x4x128xf32, #tpu.memory_space<vmem>>, vector<4x4x128xf32>,
    %c0_23 = arith.constant 0 : index
    %c0_24 = arith.constant 0 : index
    %c0_25 = arith.constant 0 : index
    %15 = vector.load %arg7[%c0_23, %c0_24, %c0_25] : memref<4x4x128xf32, #tpu.memory_space<vmem>>, vector<4x4x128xf32>
    %16 = arith.mulf %11, %11 : vector<4x4x128xf32>
    %17 = arith.addf %15, %16 : vector<4x4x128xf32>
    %c0_26 = arith.constant 0 : index
    %c0_27 = arith.constant 0 : index
    %c0_28 = arith.constant 0 : index
    %18 = vector.load %arg7[%c0_26, %c0_27, %c0_28] : memref<4x4x128xf32, #tpu.memory_space<vmem>>, vector<4x4x128xf32>
    tpu.vector_store %arg7[%c0_26, %c0_27, %c0_28], %17 {strides = array<i32>} : memref<4x4x128xf32, #tpu.memory_space<vmem>>, vector<4x4x128xf32>,
    %c0_i32_29 = arith.constant 0 : i32
    %19 = arith.cmpi eq, %arg2, %c0_i32_29 : i32
    %20 = arith.extui %19 : i1 to i32
    %c0_i32_30 = arith.constant 0 : i32
    %21 = arith.cmpi ne, %20, %c0_i32_30 : i32
    scf.if %21 {
      %c0_31 = arith.constant 0 : index
      %c0_32 = arith.constant 0 : index
      %c0_33 = arith.constant 0 : index
      %22 = vector.load %arg6[%c0_31, %c0_32, %c0_33] : memref<4x4x128xf32, #tpu.memory_space<vmem>>, vector<4x4x128xf32>
      %cst = arith.constant dense<0.000000e+00> : vector<4x4xf32>
      %23 = vector.multi_reduction <add>, %22, %cst [2] : vector<4x4x128xf32> to vector<4x4xf32>
      %c0_34 = arith.constant 0 : index
      %c0_35 = arith.constant 0 : index
      %c0_36 = arith.constant 0 : index
      %24 = vector.load %arg7[%c0_34, %c0_35, %c0_36] : memref<4x4x128xf32, #tpu.memory_space<vmem>>, vector<4x4x128xf32>
      %cst_37 = arith.constant dense<0.000000e+00> : vector<4x4xf32>
      %25 = vector.multi_reduction <add>, %24, %cst_37 [2] : vector<4x4x128xf32> to vector<4x4xf32>
      %cst_38 = arith.constant 3.906250e-03 : f32
      %26 = vector.broadcast %cst_38 : f32 to vector<4x4xf32>
      %27 = arith.mulf %23, %26 : vector<4x4xf32>
      %28 = arith.mulf %23, %27 : vector<4x4xf32>
      %29 = arith.subf %25, %28 : vector<4x4xf32>
      %cst_39 = arith.constant 0.00392156886 : f32
      %30 = vector.broadcast %cst_39 : f32 to vector<4x4xf32>
      %31 = arith.mulf %29, %30 : vector<4x4xf32>
      %c0_40 = arith.constant 0 : index
      %c0_41 = arith.constant 0 : index
      %32 = vector.load %arg4[%c0_40, %c0_41] : memref<4x4xf32, #tpu.memory_space<vmem>>, vector<4x4xf32>
      tpu.vector_store %arg4[%c0_40, %c0_41], %27 {strides = array<i32>} : memref<4x4xf32, #tpu.memory_space<vmem>>, vector<4x4xf32>,
      %c0_42 = arith.constant 0 : index
      %c0_43 = arith.constant 0 : index
      %33 = vector.load %arg5[%c0_42, %c0_43] : memref<4x4xf32, #tpu.memory_space<vmem>>, vector<4x4xf32>
      tpu.vector_store %arg5[%c0_42, %c0_43], %31 {strides = array<i32>} : memref<4x4xf32, #tpu.memory_space<vmem>>, vector<4x4xf32>,
    } else {
    }
    return
  }
  func.func @transform_0(%arg0: i32, %arg1: i32, %arg2: i32) -> (i32, i32, i32) {
    %c0_i32 = arith.constant 0 : i32
    return %arg0, %arg1, %arg2 : i32, i32, i32
  }
  func.func @transform_1(%arg0: i32, %arg1: i32, %arg2: i32) -> (i32, i32) {
    %c0_i32 = arith.constant 0 : i32
    return %arg0, %arg1 : i32, i32
  }
  func.func @transform_2(%arg0: i32, %arg1: i32, %arg2: i32) -> (i32, i32) {
    %c0_i32 = arith.constant 0 : i32
    return %arg0, %arg1 : i32, i32
  }
}

</mosaic_0001>

<bundles_post_ra>
// kernel: _update_scale.1
= control target key start
LH: loop header
LB: loop body
LE: loop exit
PB: predicated region body
PF: predicated region fallthrough
CT: control target
= control target key end

     0   :  { %v179_v0 = vmov 0.0   ;;  %vm93_vm0 = vcmask 1043456   ;;  %vm148_vm1 = vcmask 1041409   ;;  %vm150_vm2 = vcmask 1042434   ;;  %s241_s0 = inlined_call_operand.vmem [shape: f32[4,4,256], index: 0, kind: input, shape index: {}]   ;;  %s242_s1 = inlined_call_operand.vmem [shape: f32[4,4], index: 1, kind: output, shape index: {0}]   ;;  %s243_s2 = inlined_call_operand.vmem [shape: f32[4,4], index: 2, kind: output, shape index: {1}]  }
   0x1   :  { %16 = vst [vmem:[#allocation2 + $0x8] sm:$0xf] %v179_v0  ;;  %v24_v1 = vld [vmem:[%s241_s0 + $0x10] sm:$0xf]  ;;  %v22_v2 = vld [vmem:[%s241_s0] sm:$0xf] }
   0x2   :  { %14 = vst [vmem:[#allocation2] sm:$0xf] %v179_v0  ;;  %v23_v4 = vld [vmem:[%s241_s0 + $0x8] sm:$0xf]  ;;  %v42_v7 = vmul.f32 %v22_v2, %v22_v2  ;;  %v25_v8 = vld [vmem:[%s241_s0 + $0x18] sm:$0xf]  ;;  %v44_v12 = vmul.f32 %v24_v1, %v24_v1 }
   0x3   :  { %15 = vst [vmem:[#allocation2 + $0x4] sm:$0xf] %v179_v0  ;;  %v43_v11 = vmul.f32 %v23_v4, %v23_v4  ;;  %v45_v17 = vmul.f32 %v25_v8, %v25_v8  ;;  %v56_v24 = vld [vmem:[%s241_s0 + $0x14] sm:$0xf]  ;;  %v54_v26 = vld [vmem:[%s241_s0 + $0x4] sm:$0xf] }
   0x4   :  { %17 = vst [vmem:[#allocation2 + $0xc] sm:$0xf] %v179_v0  ;;  %v55_v28 = vld [vmem:[%s241_s0 + $0xc] sm:$0xf]  ;;  %v74_v31 = vmul.f32 %v54_v26, %v54_v26  ;;  %v57_v32 = vld [vmem:[%s241_s0 + $0x1c] sm:$0xf]  ;;  %v76_v36 = vmul.f32 %v56_v24, %v56_v24 }
   0x5   :  { %18 = vst [vmem:[#allocation3] sm:$0xf] %v179_v0  ;;  %v75_v35 = vmul.f32 %v55_v28, %v55_v28  ;;  %v77_v41 = vmul.f32 %v57_v32, %v57_v32  ;;  %vm152_vm3 = vcmask 1043459   ;;  %vm155_vm4 = vcmask 27648  }
   0x6   :  { %19 = vst [vmem:[#allocation3 + $0x4] sm:$0xf] %v179_v0 }
   0x7   :  { %20 = vst [vmem:[#allocation3 + $0x8] sm:$0xf] %v179_v0 }
   0x8   :  { %v28_v3 = vld [vmem:[#allocation2 + $0x8] sm:$0xf]  ;;  %21 = vst [vmem:[#allocation3 + $0xc] sm:$0xf] %v179_v0 }
   0x9   :  { %v32_v5 = vadd.f32 %v28_v3, %v24_v1  ;;  %v26_v6 = vld [vmem:[#allocation2] sm:$0xf]  ;;  %v142_v3 = vlaneseq }
   0xa   :  { %v30_v9 = vadd.f32 %v26_v6, %v22_v2  ;;  %v27_v10 = vld [vmem:[#allocation2 + $0x4] sm:$0xf] }
   0xb   :  { %36 = vst [vmem:[#allocation2 + $0x8] sm:$0xf] %v32_v5  ;;  %v29_v13 = vld [vmem:[#allocation2 + $0xc] sm:$0xf]  ;;  %v31_v14 = vadd.f32 %v27_v10, %v23_v4  ;;  %v143_v6 = vand.u32 127, %v142_v3 }
   0xc   :  { %34 = vst [vmem:[#allocation2] sm:$0xf] %v30_v9  ;;  %v38_v15 = vld [vmem:[#allocation3] sm:$0xf]  ;;  %v33_v16 = vadd.f32 %v29_v13, %v25_v8 }
   0xd   :  { %v46_v18 = vadd.f32 %v42_v7, %v38_v15  ;;  %35 = vst [vmem:[#allocation2 + $0x4] sm:$0xf] %v31_v14  ;;  %v39_v19 = vld [vmem:[#allocation3 + $0x4] sm:$0xf] }
   0xe   :  { %37 = vst [vmem:[#allocation2 + $0xc] sm:$0xf] %v33_v16  ;;  %v47_v20 = vadd.f32 %v43_v11, %v39_v19  ;;  %v40_v21 = vld [vmem:[#allocation3 + $0x8] sm:$0xf] }
   0xf   :  { %50 = vst [vmem:[#allocation3] sm:$0xf] %v46_v18  ;;  %v41_v22 = vld [vmem:[#allocation3 + $0xc] sm:$0xf]  ;;  %v48_v23 = vadd.f32 %v44_v12, %v40_v21 }
  0x10   :  { %51 = vst [vmem:[#allocation3 + $0x4] sm:$0xf] %v47_v20  ;;  %v49_v25 = vadd.f32 %v45_v17, %v41_v22 }
  0x11   :  { %52 = vst [vmem:[#allocation3 + $0x8] sm:$0xf] %v48_v23 }
  0x12   :  { %v60_v27 = vld [vmem:[#allocation2 + $0x8] sm:$0xf]  ;;  %53 = vst [vmem:[#allocation3 + $0xc] sm:$0xf] %v49_v25 }
  0x13   :  { %v64_v29 = vadd.f32 %v60_v27, %v56_v24  ;;  %v58_v30 = vld [vmem:[#allocation2] sm:$0xf] }
  0x14   :  { %v62_v33 = vadd.f32 %v58_v30, %v54_v26  ;;  %v59_v34 = vld [vmem:[#allocation2 + $0x4] sm:$0xf] }
  0x15   :  { %68 = vst [vmem:[#allocation2 + $0x8] sm:$0xf] %v64_v29  ;;  %v61_v37 = vld [vmem:[#allocation2 + $0xc] sm:$0xf]  ;;  %v63_v38 = vadd.f32 %v59_v34, %v55_v28 }
  0x16   :  { %66 = vst [vmem:[#allocation2] sm:$0xf] %v62_v33  ;;  %v70_v39 = vld [vmem:[#allocation3] sm:$0xf]  ;;  %v65_v40 = vadd.f32 %v61_v37, %v57_v32 }
  0x17   :  { %v78_v42 = vadd.f32 %v74_v31, %v70_v39  ;;  %67 = vst [vmem:[#allocation2 + $0x4] sm:$0xf] %v63_v38  ;;  %v71_v43 = vld [vmem:[#allocation3 + $0x4] sm:$0xf] }
  0x18   :  { %69 = vst [vmem:[#allocation2 + $0xc] sm:$0xf] %v65_v40  ;;  %v79_v44 = vadd.f32 %v75_v35, %v71_v43  ;;  %v72_v45 = vld [vmem:[#allocation3 + $0x8] sm:$0xf] }
  0x19   :  { %82 = vst [vmem:[#allocation3] sm:$0xf] %v78_v42  ;;  %v73_v46 = vld [vmem:[#allocation3 + $0xc] sm:$0xf]  ;;  %v80_v47 = vadd.f32 %v76_v36, %v72_v45 }
  0x1a   :  { %83 = vst [vmem:[#allocation3 + $0x4] sm:$0xf] %v79_v44  ;;  %v81_v48 = vadd.f32 %v77_v41, %v73_v46 }
  0x1b   :  { %84 = vst [vmem:[#allocation3 + $0x8] sm:$0xf] %v80_v47 }
  0x1c   :  { %v91_v49 = vld [vmem:[#allocation2 + $0x8] sm:$0xf]  ;;  %85 = vst [vmem:[#allocation3 + $0xc] sm:$0xf] %v81_v48 }
  0x1d   :  { %v100_v50 = vsel %vm93_vm0, %v91_v49, 0.0  ;;  %v89_v51 = vld [vmem:[#allocation2] sm:$0xf] }
  0x1e   :  { %101 = vadd.xlane.f32.xlu1 %v100_v50  ;;  %v94_v52 = vsel %vm93_vm0, %v89_v51, 0.0  ;;  %v90_v56 = vld [vmem:[#allocation2 + $0x4] sm:$0xf] }
  0x1f   :  { %95 = vadd.xlane.f32.xlu0 %v94_v52  ;;  %v92_v54 = vld [vmem:[#allocation2 + $0xc] sm:$0xf]  ;;  %v97_v58 = vsel %vm93_vm0, %v90_v56, 0.0 }
  0x20   :  { %v106_v53 = vld [vmem:[#allocation3] sm:$0xf]  ;;  %v103_v57 = vsel %vm93_vm0, %v92_v54, 0.0 }
  0x21   :  { %v110_v55 = vsel %vm93_vm0, %v106_v53, 0.0  ;;  %v107_v59 = vld [vmem:[#allocation3 + $0x4] sm:$0xf] }
  0x22   :  { %111 = vadd.xlane.f32.xlu2 %v110_v55  ;;  %v113_v60 = vsel %vm93_vm0, %v107_v59, 0.0  ;;  %v108_v62 = vld [vmem:[#allocation3 + $0x8] sm:$0xf] }
  0x23   :  { %v109_v61 = vld [vmem:[#allocation3 + $0xc] sm:$0xf]  ;;  %v116_v0 = vsel %vm93_vm0, %v108_v62, 0.0 }
  0x24   :  { %v119_v63 = vsel %vm93_vm0, %v109_v61, 0.0 }
  0x26   :  { %104 = vadd.xlane.f32.xlu1 %v103_v57 }
  0x27   :  { %98 = vadd.xlane.f32.xlu0 %v97_v58 }
  0x2a   :  { %114 = vadd.xlane.f32.xlu2 %v113_v60 }
  0x2e   :  { %120 = vadd.xlane.f32.xlu1 %v119_v63 }
  0x2f   :  { %117 = vadd.xlane.f32.xlu0 %v116_v0 }
  0x91   :  { %v102_v1 = vpop.xlane.xlu1 %101 }
  0x92   :  { %v96_v2 = vpop.xlane.xlu0 %95  ;;  %v124_v8 = vmul.f32 0.00390625, %v102_v1 }
  0x93   :  { %v122_v5 = vmul.f32 0.00390625, %v96_v2 }
  0x94   :  { %v146_v18 = vperm.slane %v124_v8, %v143_v6  ;;  %v128_v24 = vmul.f32 %v124_v8, %v102_v1 }
  0x95   :  { %v112_v4 = vpop.xlane.xlu2 %111  ;;  %v126_v9 = vmul.f32 %v122_v5, %v96_v2  ;;  %v144_v13 = vperm.slane %v122_v5, %v143_v6 }
  0x97   :  { %v130_v19 = vsub.f32 %v112_v4, %v126_v9 }
  0x99   :  { %v105_v7 = vpop.xlane.xlu1 %104  ;;  %v134_v28 = vmul.f32 0.003921569, %v130_v19 }
  0x9a   :  { %v125_v10 = vmul.f32 0.00390625, %v105_v7  ;;  %v99_v11 = vpop.xlane.xlu0 %98 }
  0x9b   :  { %v123_v12 = vmul.f32 0.00390625, %v99_v11  ;;  %v161_v35 = vperm.slane %v134_v28, %v143_v6 }
  0x9c   :  { %v147_v14 = vperm.slane %v125_v10, %v143_v6  ;;  %v129_v22 = vmul.f32 %v125_v10, %v105_v7 }
  0x9d   :  { %v127_v15 = vmul.f32 %v123_v12, %v99_v11  ;;  %v145_v16 = vperm.slane %v123_v12, %v143_v6  ;;  %v115_v17 = vpop.xlane.xlu2 %114 }
  0x9f   :  { %v149_v20 = vsel %vm148_vm1, %v145_v16, %v144_v13  ;;  %v131_v21 = vsub.f32 %v115_v17, %v127_v15 }
  0xa0   :  { %v151_v23 = vsel %vm150_vm2, %v146_v18, %v149_v20 }
  0xa1   :  { %v135_v25 = vmul.f32 0.003921569, %v131_v21  ;;  %v121_v26 = vpop.xlane.xlu1 %120  ;;  %v153_v27 = vsel %vm152_vm3, %v147_v14, %v151_v23 }
  0xa2   :  { %v133_v29 = vsub.f32 %v121_v26, %v129_v22  ;;  %156 = vst.msk [vmem:[%s242_s1] sm:$0xf] %vm155_vm4, %v153_v27  ;;  %v118_v30 = vpop.xlane.xlu0 %117 }
  0xa3   :  { %v132_v31 = vsub.f32 %v118_v30, %v128_v24  ;;  %v162_v32 = vperm.slane %v135_v25, %v143_v6 }
  0xa4   :  { %v137_v33 = vmul.f32 0.003921569, %v133_v29 }
  0xa5   :  { %v136_v34 = vmul.f32 0.003921569, %v132_v31  ;;  %v165_v38 = vsel %vm148_vm1, %v162_v32, %v161_v35 }
  0xa6   :  { %v164_v36 = vperm.slane %v137_v33, %v143_v6 }
  0xa7   :  { %v163_v37 = vperm.slane %v136_v34, %v143_v6 }
  0xa9   :  { %v166_v39 = vsel %vm150_vm2, %v163_v37, %v165_v38 }
  0xaa   :  { %v167_v40 = vsel %vm152_vm3, %v164_v36, %v166_v39 }
  0xab   :  { %169 = vst.msk [vmem:[%s243_s2] sm:$0xf] %vm155_vm4, %v167_v40 }

</bundles_post_ra>
